<compile_context>
chip_gen: v6e
topology: v6e:2x2x1
jax: 0.10.0
libtpu: 0.0.40
codegen_flags: <defaults>
</compile_context>

<pallas_src>
import functools

import jax
import jax.numpy as jnp
from jax.experimental import pallas as pl
from jax.experimental.pallas import tpu as pltpu

GAMMA = 0.25
EPS = 1e-6


def _modified_linear_kernel(x_ref, w_ref, b_ref, o_ref, acc_z_ref, acc_a_ref):
    k = pl.program_id(2)

    @pl.when(k == 0)
    def _init():
        acc_z_ref[...] = jnp.zeros_like(acc_z_ref)
        acc_a_ref[...] = jnp.zeros_like(acc_a_ref)

    x = x_ref[...]                      # (tm, tk) f32
    w = w_ref[...]                      # (tk, tn) f32  (already W^T layout)

    # Two MXU products per tile: plain matmul and abs-matmul.
    acc_z_ref[...] += jnp.dot(x, w, preferred_element_type=jnp.float32)
    acc_a_ref[...] += jnp.dot(jnp.abs(x), jnp.abs(w),
                              preferred_element_type=jnp.float32)

    @pl.when(k == pl.num_programs(2) - 1)
    def _epilogue():
        b = b_ref[...]                                   # (1, tn) broadcasts over rows
        b_pos = b + GAMMA * jnp.maximum(b, 0.0)          # b + g*relu(b)
        b_neg = b + GAMMA * jnp.minimum(b, 0.0)          # b + g*min(b,0)

        p = acc_z_ref[...]                               # x @ W^T   (this output tile)
        q = acc_a_ref[...]                               # |x| @ |W|^T

        c_pos = (2.0 + GAMMA) * 0.5                      # 1.125
        c_neg = GAMMA * 0.5                              # 0.125

        z = p + b
        sum_pos = c_pos * p + c_neg * q + (b_pos + b)    # o0 + o1
        sum_neg = c_pos * p - c_neg * q + (b_neg + b)    # o2 + o3

        zp = jnp.where(z > EPS, sum_pos, jnp.where(z < EPS, sum_neg, 0.0))
        # zp * (z / zp) == z where zp != 0, NaN where zp == 0.
        o_ref[...] = jnp.where(zp == 0.0, jnp.nan, z).astype(o_ref.dtype)


def _round_up(n, m):
    return (n + m - 1) // m * m


@functools.partial(jax.jit, static_argnames=("tm", "tn", "tk"))
def modified_linear_gamma(x, weight, bias, *, tm=256, tn=256, tk=512):
    """x: (B, S, D_in); weight: (D_out, D_in) [PyTorch layout]; bias: (D_out,)."""
    B, S, D_in = x.shape
    D_out = weight.shape[0]
    M = B * S

    # Clamp tiles so small problems satisfy the (8, 128) layout rule without
    # over-padding. Default tiles keep the per-step VMEM footprint (double-
    # buffered inputs + 2 f32 accumulators) well under the default scoped VMEM
    # limit on v5e/v6e/v7x.
    tm = min(tm, _round_up(M, 8))
    tn = min(tn, _round_up(D_out, 128))
    tk = min(tk, _round_up(D_in, 128))

    M_p = _round_up(M, tm)
    N_p = _round_up(D_out, tn)
    K_p = _round_up(D_in, tk)

    x2 = x.reshape(M, D_in).astype(jnp.float32)
    x2 = jnp.pad(x2, ((0, M_p - M), (0, K_p - D_in)))
    # Pre-transpose W to (D_in, D_out) so the kernel does plain (M,K)x(K,N) MXU matmuls.
    wt = jnp.pad(weight.astype(jnp.float32).T, ((0, K_p - D_in), (0, N_p - D_out)))
    b2 = jnp.pad(bias.astype(jnp.float32).reshape(1, D_out), ((0, 0), (0, N_p - D_out)))

    grid = (M_p // tm, N_p // tn, K_p // tk)

    cost = pl.CostEstimate(
        flops=int(2 * 2 * M_p * K_p * N_p),
        transcendentals=0,
        bytes_accessed=int(4 * (M_p * K_p + K_p * N_p + N_p + M_p * N_p)))

    out = pl.pallas_call(
        _modified_linear_kernel,
        out_shape=jax.ShapeDtypeStruct((M_p, N_p), jnp.float32),
        grid_spec=pltpu.PrefetchScalarGridSpec(
            num_scalar_prefetch=0,
            grid=grid,
            in_specs=[
                pl.BlockSpec((tm, tk), lambda i, j, k: (i, k)),   # x (padded)
                pl.BlockSpec((tk, tn), lambda i, j, k: (k, j)),   # W^T (D_in, D_out)
                pl.BlockSpec((1, tn), lambda i, j, k: (0, j)),    # bias
            ],
            out_specs=pl.BlockSpec((tm, tn), lambda i, j, k: (i, j)),
            scratch_shapes=[pltpu.VMEM((tm, tn), jnp.float32),    # acc for x@W^T
                            pltpu.VMEM((tm, tn), jnp.float32)],   # acc for |x|@|W|^T
        ),
        compiler_params=pltpu.CompilerParams(
            dimension_semantics=("parallel", "parallel", "arbitrary")),
        cost_estimate=cost,
    )(x2, wt, b2)

    return out[:M, :D_out].reshape(B, S, D_out)


def _reference(x, weight, bias):
    """Pure-JAX reference of the PyTorch forward (gamma path)."""
    z = jnp.einsum("bsi,oi->bso", x, weight) + bias
    x_pos = jnp.maximum(x, 0.0)
    x_neg = jnp.minimum(x, 0.0)
    w_pos = weight + GAMMA * jnp.maximum(weight, 0.0)
    w_neg = weight + GAMMA * jnp.minimum(weight, 0.0)
    b_pos = bias + GAMMA * jnp.maximum(bias, 0.0)
    b_neg = bias + GAMMA * jnp.minimum(bias, 0.0)
    o0 = jnp.einsum("bsi,oi->bso", x_pos, w_pos) + b_pos
    o1 = jnp.einsum("bsi,oi->bso", x_neg, w_neg) + bias
    o2 = jnp.einsum("bsi,oi->bso", x_pos, w_neg) + b_neg
    o3 = jnp.einsum("bsi,oi->bso", x_neg, w_pos) + bias
    zp = (o0 + o1) * (z > EPS) + (o2 + o3) * (z < EPS)
    return zp * (z / zp)


if __name__ == "__main__":
    B, S, D_in, D_out = 2, 8, 32, 64

    key = jax.random.PRNGKey(0)
    kx, kw, kb = jax.random.split(key, 3)
    x = jax.random.normal(kx, (B, S, D_in), dtype=jnp.float32)
    # nn.Linear(D_in, D_out): weight (D_out, D_in), bias (D_out,)
    weight = jax.random.normal(kw, (D_out, D_in), dtype=jnp.float32) * 0.1
    bias = jax.random.normal(kb, (D_out,), dtype=jnp.float32) * 0.1

    out = modified_linear_gamma(x, weight, bias)
    out = jax.block_until_ready(out)

    ref = _reference(x, weight, bias)
    # Compare where finite (zp == 0 -> NaN in both, matching PyTorch semantics).
    mask = jnp.isfinite(ref)
    assert bool(jnp.array_equal(mask, jnp.isfinite(out)))
    assert bool(jnp.allclose(jnp.where(mask, out, 0.0),
                             jnp.where(mask, ref, 0.0),
                             atol=1e-4, rtol=1e-4))

    print("KERNEL_OK")
</pallas_src>

<mosaic_0001>
module attributes {stable_mosaic.version = 11 : i64} {
  func.func @_modified_linear_kernel(%arg0: i32, %arg1: i32, %arg2: i32, %arg3: memref<16x128xf32, #tpu.memory_space<vmem>>, %arg4: memref<128x128xf32, #tpu.memory_space<vmem>>, %arg5: memref<1x128xf32, #tpu.memory_space<vmem>>, %arg6: memref<16x128xf32, #tpu.memory_space<vmem>>, %arg7: memref<16x128xf32, #tpu.memory_space<vmem>>, %arg8: memref<16x128xf32, #tpu.memory_space<vmem>>) attributes {dimension_semantics = [#tpu.dimension_semantics<parallel>, #tpu.dimension_semantics<parallel>, #tpu.dimension_semantics<arbitrary>], iteration_bounds = array<i64: 1, 1, 1>, scalar_prefetch = 0 : i64, scratch_operands = 2 : i64, tpu.core_type = #tpu.core_type<tc>, window_params = [{transform_indices = @transform_0, window_bounds = array<i64: 16, 128>}, {transform_indices = @transform_1, window_bounds = array<i64: 128, 128>}, {transform_indices = @transform_2, window_bounds = array<i64: 1, 128>}, {transform_indices = @transform_3, window_bounds = array<i64: 16, 128>}]} {
    %c0_i32 = arith.constant 0 : i32
    %0 = arith.cmpi eq, %arg2, %c0_i32 : i32
    %1 = arith.extui %0 : i1 to i32
    %c0_i32_0 = arith.constant 0 : i32
    %2 = arith.cmpi ne, %1, %c0_i32_0 : i32
    scf.if %2 {
      %cst_15 = arith.constant 0.000000e+00 : f32
      %18 = vector.broadcast %cst_15 : f32 to vector<16x128xf32>
      %c0_16 = arith.constant 0 : index
      %c0_17 = arith.constant 0 : index
      %19 = vector.load %arg7[%c0_16, %c0_17] : memref<16x128xf32, #tpu.memory_space<vmem>>, vector<16x128xf32>
      tpu.vector_store %arg7[%c0_16, %c0_17], %18 {strides = array<i32>} : memref<16x128xf32, #tpu.memory_space<vmem>>, vector<16x128xf32>,
      %cst_18 = arith.constant 0.000000e+00 : f32
      %20 = vector.broadcast %cst_18 : f32 to vector<16x128xf32>
      %c0_19 = arith.constant 0 : index
      %c0_20 = arith.constant 0 : index
      %21 = vector.load %arg8[%c0_19, %c0_20] : memref<16x128xf32, #tpu.memory_space<vmem>>, vector<16x128xf32>
      tpu.vector_store %arg8[%c0_19, %c0_20], %20 {strides = array<i32>} : memref<16x128xf32, #tpu.memory_space<vmem>>, vector<16x128xf32>,
    } else {
    }
    %c0 = arith.constant 0 : index
    %c0_1 = arith.constant 0 : index
    %3 = vector.load %arg3[%c0, %c0_1] : memref<16x128xf32, #tpu.memory_space<vmem>>, vector<16x128xf32>
    %c0_2 = arith.constant 0 : index
    %c0_3 = arith.constant 0 : index
    %4 = vector.load %arg4[%c0_2, %c0_3] : memref<128x128xf32, #tpu.memory_space<vmem>>, vector<128x128xf32>
    %c0_4 = arith.constant 0 : index
    %c0_5 = arith.constant 0 : index
    %5 = vector.load %arg7[%c0_4, %c0_5] : memref<16x128xf32, #tpu.memory_space<vmem>>, vector<16x128xf32>
    %cst = arith.constant dense<0.000000e+00> : vector<16x128xf32>
    %6 = tpu.matmul %3, %4, %cst {dimension_numbers = #tpu.dot_dimension_numbers<[1], [0], [0], [1], [0, 0, 1, 1], [], []>} : vector<16x128xf32>, vector<128x128xf32>, vector<16x128xf32> -> vector<16x128xf32>
    %7 = arith.addf %5, %6 : vector<16x128xf32>
    %c0_6 = arith.constant 0 : index
    %c0_7 = arith.constant 0 : index
    %8 = vector.load %arg7[%c0_6, %c0_7] : memref<16x128xf32, #tpu.memory_space<vmem>>, vector<16x128xf32>
    tpu.vector_store %arg7[%c0_6, %c0_7], %7 {strides = array<i32>} : memref<16x128xf32, #tpu.memory_space<vmem>>, vector<16x128xf32>,
    %c0_8 = arith.constant 0 : index
    %c0_9 = arith.constant 0 : index
    %9 = vector.load %arg8[%c0_8, %c0_9] : memref<16x128xf32, #tpu.memory_space<vmem>>, vector<16x128xf32>
    %10 = math.absf %3 : vector<16x128xf32>
    %11 = math.absf %4 : vector<128x128xf32>
    %cst_10 = arith.constant dense<0.000000e+00> : vector<16x128xf32>
    %12 = tpu.matmul %10, %11, %cst_10 {dimension_numbers = #tpu.dot_dimension_numbers<[1], [0], [0], [1], [0, 0, 1, 1], [], []>} : vector<16x128xf32>, vector<128x128xf32>, vector<16x128xf32> -> vector<16x128xf32>
    %13 = arith.addf %9, %12 : vector<16x128xf32>
    %c0_11 = arith.constant 0 : index
    %c0_12 = arith.constant 0 : index
    %14 = vector.load %arg8[%c0_11, %c0_12] : memref<16x128xf32, #tpu.memory_space<vmem>>, vector<16x128xf32>
    tpu.vector_store %arg8[%c0_11, %c0_12], %13 {strides = array<i32>} : memref<16x128xf32, #tpu.memory_space<vmem>>, vector<16x128xf32>,
    %c0_i32_13 = arith.constant 0 : i32
    %15 = arith.cmpi eq, %arg2, %c0_i32_13 : i32
    %16 = arith.extui %15 : i1 to i32
    %c0_i32_14 = arith.constant 0 : i32
    %17 = arith.cmpi ne, %16, %c0_i32_14 : i32
    scf.if %17 {
      %c0_15 = arith.constant 0 : index
      %c0_16 = arith.constant 0 : index
      %18 = vector.load %arg5[%c0_15, %c0_16] : memref<1x128xf32, #tpu.memory_space<vmem>>, vector<1x128xf32>
      %cst_17 = arith.constant 0.000000e+00 : f32
      %19 = vector.broadcast %cst_17 : f32 to vector<1x128xf32>
      %20 = arith.maximumf %18, %19 : vector<1x128xf32>
      %cst_18 = arith.constant 2.500000e-01 : f32
      %21 = vector.broadcast %cst_18 : f32 to vector<1x128xf32>
      %22 = arith.mulf %21, %20 : vector<1x128xf32>
      %23 = arith.addf %18, %22 : vector<1x128xf32>
      %cst_19 = arith.constant 0.000000e+00 : f32
      %24 = vector.broadcast %cst_19 : f32 to vector<1x128xf32>
      %25 = arith.minimumf %18, %24 : vector<1x128xf32>
      %cst_20 = arith.constant 2.500000e-01 : f32
      %26 = vector.broadcast %cst_20 : f32 to vector<1x128xf32>
      %27 = arith.mulf %26, %25 : vector<1x128xf32>
      %28 = arith.addf %18, %27 : vector<1x128xf32>
      %c0_21 = arith.constant 0 : index
      %c0_22 = arith.constant 0 : index
      %29 = vector.load %arg7[%c0_21, %c0_22] : memref<16x128xf32, #tpu.memory_space<vmem>>, vector<16x128xf32>
      %c0_23 = arith.constant 0 : index
      %c0_24 = arith.constant 0 : index
      %30 = vector.load %arg8[%c0_23, %c0_24] : memref<16x128xf32, #tpu.memory_space<vmem>>, vector<16x128xf32>
      %31 = vector.broadcast %18 : vector<1x128xf32> to vector<16x128xf32>
      %32 = arith.addf %29, %31 : vector<16x128xf32>
      %cst_25 = arith.constant 1.125000e+00 : f32
      %33 = vector.broadcast %cst_25 : f32 to vector<16x128xf32>
      %34 = arith.mulf %33, %29 : vector<16x128xf32>
      %cst_26 = arith.constant 1.250000e-01 : f32
      %35 = vector.broadcast %cst_26 : f32 to vector<16x128xf32>
      %36 = arith.mulf %35, %30 : vector<16x128xf32>
      %37 = arith.addf %34, %36 : vector<16x128xf32>
      %38 = arith.addf %23, %18 : vector<1x128xf32>
      %39 = vector.broadcast %38 : vector<1x128xf32> to vector<16x128xf32>
      %40 = arith.addf %37, %39 : vector<16x128xf32>
      %cst_27 = arith.constant 1.125000e+00 : f32
      %41 = vector.broadcast %cst_27 : f32 to vector<16x128xf32>
      %42 = arith.mulf %41, %29 : vector<16x128xf32>
      %cst_28 = arith.constant 1.250000e-01 : f32
      %43 = vector.broadcast %cst_28 : f32 to vector<16x128xf32>
      %44 = arith.mulf %43, %30 : vector<16x128xf32>
      %45 = arith.subf %42, %44 : vector<16x128xf32>
      %46 = arith.addf %28, %18 : vector<1x128xf32>
      %47 = vector.broadcast %46 : vector<1x128xf32> to vector<16x128xf32>
      %48 = arith.addf %45, %47 : vector<16x128xf32>
      %cst_29 = arith.constant 9.99999997E-7 : f32
      %49 = vector.broadcast %cst_29 : f32 to vector<16x128xf32>
      %50 = arith.cmpf ogt, %32, %49 : vector<16x128xf32>
      %cst_30 = arith.constant 9.99999997E-7 : f32
      %51 = vector.broadcast %cst_30 : f32 to vector<16x128xf32>
      %52 = arith.cmpf olt, %32, %51 : vector<16x128xf32>
      %cst_31 = arith.constant 0.000000e+00 : f32
      %53 = vector.broadcast %cst_31 : f32 to vector<16x128xf32>
      %54 = arith.select %52, %48, %53 : vector<16x128xi1>, vector<16x128xf32>
      %55 = arith.select %50, %40, %54 : vector<16x128xi1>, vector<16x128xf32>
      %cst_32 = arith.constant 0.000000e+00 : f32
      %56 = vector.broadcast %cst_32 : f32 to vector<16x128xf32>
      %57 = arith.cmpf oeq, %55, %56 : vector<16x128xf32>
      %cst_33 = arith.constant 0x7FC00000 : f32
      %58 = vector.broadcast %cst_33 : f32 to vector<16x128xf32>
      %59 = arith.select %57, %58, %32 : vector<16x128xi1>, vector<16x128xf32>
      %c0_34 = arith.constant 0 : index
      %c0_35 = arith.constant 0 : index
      %60 = vector.load %arg6[%c0_34, %c0_35] : memref<16x128xf32, #tpu.memory_space<vmem>>, vector<16x128xf32>
      tpu.vector_store %arg6[%c0_34, %c0_35], %59 {strides = array<i32>} : memref<16x128xf32, #tpu.memory_space<vmem>>, vector<16x128xf32>,
    } else {
    }
    return
  }
  func.func @transform_0(%arg0: i32, %arg1: i32, %arg2: i32) -> (i32, i32) {
    %c0_i32 = arith.constant 0 : i32
    return %arg0, %arg2 : i32, i32
  }
  func.func @transform_1(%arg0: i32, %arg1: i32, %arg2: i32) -> (i32, i32) {
    %c0_i32 = arith.constant 0 : i32
    return %arg2, %arg1 : i32, i32
  }
  func.func @transform_2(%arg0: i32, %arg1: i32, %arg2: i32) -> (i32, i32) {
    %c0_i32 = arith.constant 0 : i32
    %c0_i32_0 = arith.constant 0 : i32
    return %c0_i32, %arg1 : i32, i32
  }
  func.func @transform_3(%arg0: i32, %arg1: i32, %arg2: i32) -> (i32, i32) {
    %c0_i32 = arith.constant 0 : i32
    return %arg0, %arg1 : i32, i32
  }
}

</mosaic_0001>

<bundles_post_ra>
// kernel: modified_linear_gamma.1
= control target key start
LH: loop header
LB: loop body
LE: loop exit
PB: predicated region body
PF: predicated region fallthrough
CT: control target
= control target key end

     0   :  { %v235_v39 = vlaneseq  ;;  %s475_s1 = inlined_call_operand.vmem [shape: f32[128,128], index: 1, kind: input, shape index: {}]   ;;  %s476_s0 = inlined_call_operand.vmem [shape: f32[16,128], index: 0, kind: input, shape index: {}]   ;;  %s477_s2 = inlined_call_operand.vmem [shape: f32[1,128], index: 2, kind: input, shape index: {}]   ;;  %s478_s3 = inlined_call_operand.vmem [shape: f32[16,128], index: 3, kind: output, shape index: {}]  }
   0x1   :  { %v39_v0 = vld [vmem:[%s475_s1 + $0x78] sm:$0xff]  ;;  %v38_v1 = vld [vmem:[%s475_s1 + $0x70] sm:$0xff]  ;;  %v37_v2 = vld [vmem:[%s475_s1 + $0x68] sm:$0xff] }
   0x2   :  { %322 = vmatprep.subr.mxu0 %v39_v0  ;;  %v140_v3 = vand.u32 2147483647, %v39_v0  ;;  %v139_v4 = vand.u32 2147483647, %v38_v1  ;;  %v36_v5 = vld [vmem:[%s475_s1 + $0x60] sm:$0xff]  ;;  %v35_v7 = vld [vmem:[%s475_s1 + $0x58] sm:$0xff] }
   0x3   :  { %323 = vmatpush3.msra.mxu0 %v39_v0  ;;  %v138_v6 = vand.u32 2147483647, %v37_v2  ;;  %v137_v8 = vand.u32 2147483647, %v36_v5  ;;  %v34_v9 = vld [vmem:[%s475_s1 + $0x50] sm:$0xff]  ;;  %v33_v11 = vld [vmem:[%s475_s1 + $0x48] sm:$0xff] }
   0x4   :  { %324 = vmatprep.subr.mxu0 %v38_v1  ;;  %357 = vmatprep.subr.mxu1 %v140_v3  ;;  %v136_v10 = vand.u32 2147483647, %v35_v7  ;;  %v135_v12 = vand.u32 2147483647, %v34_v9  ;;  %v32_v13 = vld [vmem:[%s475_s1 + $0x40] sm:$0xff]  ;;  %v31_v15 = vld [vmem:[%s475_s1 + $0x38] sm:$0xff] }
   0x5   :  { %325 = vmatpush3.msra.mxu0 %v38_v1  ;;  %358 = vmatpush3.msra.mxu1 %v140_v3  ;;  %v134_v14 = vand.u32 2147483647, %v33_v11  ;;  %v133_v16 = vand.u32 2147483647, %v32_v13  ;;  %v30_v17 = vld [vmem:[%s475_s1 + $0x30] sm:$0xff]  ;;  %v29_v19 = vld [vmem:[%s475_s1 + $0x28] sm:$0xff] }
   0x6   :  { %326 = vmatprep.subr.mxu0 %v37_v2  ;;  %359 = vmatprep.subr.mxu1 %v139_v4  ;;  %v132_v18 = vand.u32 2147483647, %v31_v15  ;;  %v131_v20 = vand.u32 2147483647, %v30_v17  ;;  %v28_v21 = vld [vmem:[%s475_s1 + $0x20] sm:$0xff]  ;;  %v27_v23 = vld [vmem:[%s475_s1 + $0x18] sm:$0xff] }
   0x7   :  { %327 = vmatpush3.msra.mxu0 %v37_v2  ;;  %360 = vmatpush3.msra.mxu1 %v139_v4  ;;  %v130_v22 = vand.u32 2147483647, %v29_v19  ;;  %v129_v24 = vand.u32 2147483647, %v28_v21  ;;  %v26_v25 = vld [vmem:[%s475_s1 + $0x10] sm:$0xff]  ;;  %v25_v27 = vld [vmem:[%s475_s1 + $0x8] sm:$0xff] }
   0x8   :  { %328 = vmatprep.subr.mxu0 %v36_v5  ;;  %361 = vmatprep.subr.mxu1 %v138_v6  ;;  %v128_v26 = vand.u32 2147483647, %v27_v23  ;;  %v127_v28 = vand.u32 2147483647, %v26_v25  ;;  %v24_v29 = vld [vmem:[%s475_s1] sm:$0xff]  ;;  %v23_v32 = vld [vmem:[%s476_s0 + $0x8] sm:$0xff] }
   0x9   :  { %329 = vmatpush3.msra.mxu0 %v36_v5  ;;  %362 = vmatpush3.msra.mxu1 %v138_v6  ;;  %v126_v30 = vand.u32 2147483647, %v25_v27  ;;  %v22_v31 = vld [vmem:[%s476_s0] sm:$0xff]  ;;  %v125_v33 = vand.u32 2147483647, %v24_v29  ;;  %v236_v42 = vshrl.u32 %v235_v39, 7 }
   0xa   :  { %330 = vmatprep.subr.mxu0 %v35_v7  ;;  %363 = vmatprep.subr.mxu1 %v137_v8  ;;  %v123_v34 = vand.u32 2147483647, %v22_v31  ;;  %v124_v35 = vand.u32 2147483647, %v23_v32  ;;  %v223_v36 = vld [vmem:[%s477_s2] sm:$0x1] }
   0xb   :  { %331 = vmatpush3.msra.mxu0 %v35_v7  ;;  %364 = vmatpush3.msra.mxu1 %v137_v8  ;;  %v224_v37 = vmax.f32 %v223_v36, 0.0  ;;  %v227_v38 = vmin.f32 %v223_v36, 0.0  ;;  %v237_v45 = vsub.s32 0, %v236_v42 }
   0xc   :  { %332 = vmatprep.subr.mxu0 %v34_v9  ;;  %365 = vmatprep.subr.mxu1 %v136_v10 }
   0xd   :  { %333 = vmatpush3.msra.mxu0 %v34_v9  ;;  %366 = vmatpush3.msra.mxu1 %v136_v10  ;;  %v225_v40 = vmul.f32 0.25, %v224_v37  ;;  %v228_v41 = vmul.f32 0.25, %v227_v38  ;;  %v238_v49 = vrot.slane %v223_v36, %v237_v45 }
   0xe   :  { %334 = vmatprep.subr.mxu0 %v33_v11  ;;  %367 = vmatprep.subr.mxu1 %v135_v12 }
   0xf   :  { %335 = vmatpush3.msra.mxu0 %v33_v11  ;;  %368 = vmatpush3.msra.mxu1 %v135_v12  ;;  %v226_v43 = vadd.f32 %v225_v40, %v223_v36  ;;  %v229_v44 = vadd.f32 %v228_v41, %v223_v36 }
  0x10   :  { %336 = vmatprep.subr.mxu0 %v32_v13  ;;  %369 = vmatprep.subr.mxu1 %v134_v14 }
  0x11   :  { %337 = vmatpush3.msra.mxu0 %v32_v13  ;;  %370 = vmatpush3.msra.mxu1 %v134_v14  ;;  %v248_v47 = vadd.f32 %v226_v43, %v223_v36  ;;  %v259_v48 = vadd.f32 %v229_v44, %v223_v36 }
  0x12   :  { %338 = vmatprep.subr.mxu0 %v31_v15  ;;  %371 = vmatprep.subr.mxu1 %v133_v16 }
  0x13   :  { %339 = vmatpush3.msra.mxu0 %v31_v15  ;;  %372 = vmatpush3.msra.mxu1 %v133_v16  ;;  %v253_v54 = vrot.slane %v248_v47, %v237_v45  ;;  %v264_v55 = vrot.slane %v259_v48, %v237_v45 }
  0x14   :  { %340 = vmatprep.subr.mxu0 %v30_v17  ;;  %373 = vmatprep.subr.mxu1 %v132_v18 }
  0x15   :  { %341 = vmatpush3.msra.mxu0 %v30_v17  ;;  %374 = vmatpush3.msra.mxu1 %v132_v18 }
  0x16   :  { %342 = vmatprep.subr.mxu0 %v29_v19  ;;  %375 = vmatprep.subr.mxu1 %v131_v20 }
  0x17   :  { %343 = vmatpush3.msra.mxu0 %v29_v19  ;;  %376 = vmatpush3.msra.mxu1 %v131_v20 }
  0x18   :  { %344 = vmatprep.subr.mxu0 %v28_v21  ;;  %377 = vmatprep.subr.mxu1 %v130_v22 }
  0x19   :  { %345 = vmatpush3.msra.mxu0 %v28_v21  ;;  %378 = vmatpush3.msra.mxu1 %v130_v22 }
  0x1a   :  { %346 = vmatprep.subr.mxu0 %v27_v23  ;;  %379 = vmatprep.subr.mxu1 %v129_v24 }
  0x1b   :  { %347 = vmatpush3.msra.mxu0 %v27_v23  ;;  %380 = vmatpush3.msra.mxu1 %v129_v24 }
  0x1c   :  { %348 = vmatprep.subr.mxu0 %v26_v25  ;;  %381 = vmatprep.subr.mxu1 %v128_v26 }
  0x1d   :  { %349 = vmatpush3.msra.mxu0 %v26_v25  ;;  %382 = vmatpush3.msra.mxu1 %v128_v26 }
  0x1e   :  { %350 = vmatprep.subr.mxu0 %v25_v27  ;;  %383 = vmatprep.subr.mxu1 %v127_v28 }
  0x1f   :  { %351 = vmatpush3.msra.mxu0 %v25_v27  ;;  %384 = vmatpush3.msra.mxu1 %v127_v28 }
  0x20   :  { %352 = vmatprep.subr.mxu0 %v24_v29  ;;  %385 = vmatprep.subr.mxu1 %v126_v30 }
  0x21   :  { %353 = vmatpush3.msra.mxu0 %v24_v29  ;;  %354 = vmatprep.mubr.f32.mxu0 %v22_v31 }
  0x22   :  { %386 = vmatpush3.msra.mxu1 %v126_v30  ;;  %355 = vmatmul.mubr.f32.vlgmr.msra.gmra.mxu0 %v23_v32 }
  0x23   :  { %387 = vmatprep.subr.mxu1 %v125_v33  ;;  %389 = vmatprep.mubr.f32.mxu1 %v123_v34 }
  0x24   :  { %388 = vmatpush3.msra.mxu1 %v125_v33 }
  0x25   :  { %390 = vmatmul.mubr.f32.vlgmr.msra.gmra.mxu1 %v124_v35 }
  0xe2   :  { %v356_v46 = vpop.f32.mrf.mxu0 }
  0xe3   :  { %v243_v50 = vmul.f32 1.125, %v356_v46  ;;  %v241_v56 = vadd.f32 %v356_v46, %v238_v49 }
  0xe4   :  { %v108_v51 = vpop.f32.mrf.mxu0 }
  0xe5   :  { %v391_v52 = vpop.f32.mrf.mxu1  ;;  %v242_v58 = vmul.f32 1.125, %v108_v51  ;;  %v240_v62 = vadd.f32 %v238_v49, %v108_v51  ;;  %vm271_vm0 = vcmp.lt.f32.partialorder %v241_v56, 1e-06  ;;  %vm269_vm1 = vcmp.gt.f32.partialorder %v241_v56, 1e-06 }
  0xe6   :  { %v245_v53 = vmul.f32 0.125, %v391_v52 }
  0xe7   :  { %v207_v57 = vpop.f32.mrf.mxu1  ;;  %vm270_vm2 = vcmp.lt.f32.partialorder %v240_v62, 1e-06  ;;  %vm268_vm3 = vcmp.gt.f32.partialorder %v240_v62, 1e-06 }
  0xe8   :  { %v247_v59 = vadd.f32 %v245_v53, %v243_v50  ;;  %v258_v60 = vsub.f32 %v243_v50, %v245_v53  ;;  %v244_v61 = vmul.f32 0.125, %v207_v57 }
  0xea   :  { %v256_v63 = vadd.f32 %v253_v54, %v247_v59  ;;  %v267_v0 = vadd.f32 %v264_v55, %v258_v60  ;;  %v246_v1 = vadd.f32 %v244_v61, %v242_v58  ;;  %v257_v2 = vsub.f32 %v242_v58, %v244_v61 }
  0xec   :  { %v273_v3 = vsel %vm271_vm0, %v267_v0, 0.0  ;;  %v255_v4 = vadd.f32 %v253_v54, %v246_v1  ;;  %v266_v5 = vadd.f32 %v264_v55, %v257_v2 }
  0xed   :  { %v275_v6 = vsel %vm269_vm1, %v256_v63, %v273_v3 }
  0xee   :  { %vm277_vm4 = vcmp.eq.f32.partialorder %v275_v6, 0.0  ;;  %v272_v7 = vsel %vm270_vm2, %v266_v5, 0.0 }
  0xef   :  { %v279_v8 = vsel %vm277_vm4, nan, %v241_v56  ;;  %v274_v9 = vsel %vm268_vm3, %v255_v4, %v272_v7 }
  0xf0   :  { %281 = vst [vmem:[%s478_s3 + $0x8] sm:$0xff] %v279_v8  ;;  %vm276_vm5 = vcmp.eq.f32.partialorder %v274_v9, 0.0 }
  0xf1   :  { %v278_v10 = vsel %vm276_vm5, nan, %v240_v62 }
  0xf2   :  { %280 = vst [vmem:[%s478_s3] sm:$0xff] %v278_v10 }

</bundles_post_ra>
